<compile_context>
chip_gen: v7x
topology: tpu7x:2x2x1
jax: 0.10.0
libtpu: 0.0.40
codegen_flags: <defaults>
</compile_context>

<pallas_src>
import functools

import jax
import jax.numpy as jnp
from jax.experimental import pallas as pl
from jax.experimental.pallas import tpu as pltpu

_MIB = 1024 * 1024


def _round_up(x: int, m: int) -> int:
    return (x + m - 1) // m * m


@functools.lru_cache(maxsize=1)
def _vmem_limit_bytes() -> int:
    """Per-generation scoped-VMEM budget for this kernel.

    v5e/v6e: 128 MiB physical -> use 64 MiB.  v7x: 64 MiB physical -> use 32 MiB.
    Falls back to a conservative 32 MiB if the hardware query is unavailable.
    """
    try:
        phys = int(pltpu.get_tpu_info().vmem_capacity_bytes)
    except Exception:
        phys = 64 * _MIB
    return max(16 * _MIB, min(phys // 2, 64 * _MIB))


def _pick_tile_b(batch: int, n_feature: int, x_itemsize: int, vmem_limit: int) -> int:
    """Largest batch tile (multiple of 8) that fits the VMEM budget, with a mild cap so
    big batches keep >= ~4 grid steps for dual-TC sharding on v7x."""
    # Bytes of VMEM per batch row held by the pipeline:
    #   x tile      : n_feature * itemsize, double-buffered
    #   output tile : (TILE_B, 1) f32 is lane-padded to 128 lanes -> 512 B/row, x2 buffers
    per_row = 2 * n_feature * x_itemsize + 2 * 512
    # Resident (1, F) weight block, sublane/lane padded to (8, round_up(F,128)) f32, x2.
    weight_bytes = 2 * 8 * _round_up(max(n_feature, 128), 128) * 4
    usable = vmem_limit - weight_bytes - 2 * _MIB          # slack for compiler scratch
    byte_tile = max(8, (usable // per_row) // 8 * 8)

    # Keep >= ~4 grid steps so dimension_semantics=("parallel",) can shard across the
    # two TensorCores on v7x -- but never shrink a step below ~8 MiB of x traffic
    # (per-step overhead ~0.35 us must stay a small fraction of each step's DMA time).
    rows_for_4_steps = _round_up(pl.cdiv(batch, 4), 8)
    rows_8mib = max(8, (8 * _MIB // (n_feature * x_itemsize)) // 8 * 8)
    tile_b = min(byte_tile, max(rows_for_4_steps, rows_8mib))

    # Never allocate a block larger than the (8-row rounded) batch.
    return max(8, min(tile_b, _round_up(batch, 8)))


def linear_kernel(x_ref, w_ref, b_ref, o_ref):
    """One batch tile of y = x @ W^T + b  (out_features == 1).

    x_ref: (TILE_B, F) VMEM  -- streamed input tile (double-buffered by Pallas)
    w_ref: (1, F)      VMEM  -- lane-dense weight, resident across all grid steps
    b_ref: (1, 1)      SMEM  -- scalar bias
    o_ref: (TILE_B, 1) VMEM
    """
    # VPU broadcast multiply + XLU lane reduction.  The MXU is deliberately avoided:
    # a single output column would waste the systolic array and add push/pop latency
    # to a kernel that is purely HBM-bandwidth bound.
    x = x_ref[...].astype(jnp.float32)      # f32 accumulate (v5e VPU has no bf16)
    w = w_ref[...].astype(jnp.float32)      # (1, F) broadcasts over the batch rows
    # Note: for very large F (multi-thousand lanes) a chunked fori_loop(unroll=True)
    # accumulation would bound vreg pressure; for typical F this fuses without spills.
    acc = jnp.sum(x * w, axis=-1, keepdims=True)           # (TILE_B, 1) f32
    o_ref[...] = (acc + b_ref[0, 0]).astype(o_ref.dtype)   # scalar bias from SMEM


@jax.jit
def linear_net_forward(x, weight, bias):
    """Pallas forward of LinearNet: y = x @ weight.T + bias.

    x:      (batch, n_feature) float32 or bfloat16 (streamed in its native dtype)
    weight: (1, n_feature)     -- PyTorch nn.Linear layout, used as-is (lane-dense)
    bias:   (1,)
    returns (batch, 1) float32
    """
    batch, n_feature = x.shape
    assert weight.shape == (1, n_feature)

    vmem_limit = _vmem_limit_bytes()
    tile_b = _pick_tile_b(batch, n_feature, x.dtype.itemsize, vmem_limit)
    grid = (pl.cdiv(batch, tile_b),)   # ragged batch: Pallas clips the partial last block

    b_smem = bias.reshape(1, 1).astype(jnp.float32)

    cost = pl.CostEstimate(
        flops=2 * batch * n_feature,
        transcendentals=0,
        bytes_accessed=batch * n_feature * x.dtype.itemsize   # x read
        + batch * 4                                            # y write
        + n_feature * weight.dtype.itemsize + 4,               # weight + bias
    )

    return pl.pallas_call(
        linear_kernel,
        out_shape=jax.ShapeDtypeStruct((batch, 1), jnp.float32),
        grid=grid,
        in_specs=[
            # x: one (TILE_B, F) tile per grid step, double-buffered by Pallas.
            pl.BlockSpec((tile_b, n_feature), lambda i: (i, 0)),
            # weight: constant block index -> stays resident in VMEM, DMA'd once.
            pl.BlockSpec((1, n_feature), lambda i: (0, 0)),
            # bias: scalar in SMEM (frees a VMEM tile + a vector-load slot per step).
            pl.BlockSpec((1, 1), lambda i: (0, 0),
                         memory_space=pltpu.MemorySpace.SMEM),
        ],
        # (TILE_B, 1) output: its HBM traffic is 1/F of x's, so the masked store is off
        # the critical path; its lane-padded VMEM cost is accounted for in _pick_tile_b.
        out_specs=pl.BlockSpec((tile_b, 1), lambda i: (i, 0)),
        compiler_params=pltpu.CompilerParams(
            dimension_semantics=("parallel",),   # dual-TC sharding on v7x; no-op v5e/v6e
            vmem_limit_bytes=int(vmem_limit),
        ),
        cost_estimate=cost,
    )(x, weight, b_smem)


if __name__ == "__main__":
    key = jax.random.PRNGKey(0)

    # Small cases: single tile, tiny feature dim, ragged batch (partial last block).
    cases = [(8, 32), (2, 4), (300, 64)]
    for i, (batch, n_feature) in enumerate(cases):
        kx, kw, kb = jax.random.split(jax.random.fold_in(key, i), 3)
        bound = 1.0 / (n_feature ** 0.5)
        weight = jax.random.uniform(kw, (1, n_feature), jnp.float32,
                                    minval=-bound, maxval=bound)
        bias = jax.random.uniform(kb, (1,), jnp.float32, minval=-bound, maxval=bound)
        x = jax.random.normal(kx, (batch, n_feature), jnp.float32)

        y = jax.block_until_ready(linear_net_forward(x, weight, bias))
        y_ref = x @ weight.T + bias
        assert y.shape == (batch, 1), (y.shape, batch)
        assert jnp.allclose(y, y_ref, atol=1e-4, rtol=1e-4), (batch, n_feature)

    # Natively-bf16 x: streamed as-is (no wrapper-side cast pass), f32 accumulate in-kernel.
    batch, n_feature = 64, 32
    kx, kw, kb = jax.random.split(jax.random.fold_in(key, 99), 3)
    bound = 1.0 / (n_feature ** 0.5)
    weight = jax.random.uniform(kw, (1, n_feature), jnp.float32,
                                minval=-bound, maxval=bound)
    bias = jax.random.uniform(kb, (1,), jnp.float32, minval=-bound, maxval=bound)
    x_bf16 = jax.random.normal(kx, (batch, n_feature), jnp.float32).astype(jnp.bfloat16)
    y_bf16 = jax.block_until_ready(linear_net_forward(x_bf16, weight, bias))
    y_ref = x_bf16.astype(jnp.float32) @ weight.T + bias
    assert jnp.allclose(y_bf16, y_ref, atol=5e-2, rtol=5e-2)

    print("KERNEL_OK")
</pallas_src>

<mosaic_0001>
module attributes {stable_mosaic.version = 11 : i64} {
  func.func @linear_kernel(%arg0: i32, %arg1: memref<8x32xf32, #tpu.memory_space<vmem>>, %arg2: memref<1x32xf32, #tpu.memory_space<vmem>>, %arg3: memref<1x1xf32, #tpu.memory_space<smem>>, %arg4: memref<8x1xf32, #tpu.memory_space<vmem>>) attributes {dimension_semantics = [#tpu.dimension_semantics<parallel>], iteration_bounds = array<i64: 1>, scalar_prefetch = 0 : i64, scratch_operands = 0 : i64, tpu.core_type = #tpu.core_type<tc>, window_params = [{transform_indices = @transform_0, window_bounds = array<i64: 8, 32>}, {pipeline_mode = #tpu.pipeline_mode<synchronous>, transform_indices = @transform_1, window_bounds = array<i64: 1, 32>}, {transform_indices = @transform_2, window_bounds = array<i64: 1, 1>}, {transform_indices = @transform_3, window_bounds = array<i64: 8, 1>}]} {
    %c0 = arith.constant 0 : index
    %c0_0 = arith.constant 0 : index
    %0 = vector.load %arg1[%c0, %c0_0] : memref<8x32xf32, #tpu.memory_space<vmem>>, vector<8x32xf32>
    %c0_1 = arith.constant 0 : index
    %c0_2 = arith.constant 0 : index
    %1 = vector.load %arg2[%c0_1, %c0_2] : memref<1x32xf32, #tpu.memory_space<vmem>>, vector<1x32xf32>
    %2 = vector.broadcast %1 : vector<1x32xf32> to vector<8x32xf32>
    %3 = arith.mulf %0, %2 : vector<8x32xf32>
    %cst = arith.constant dense<0.000000e+00> : vector<8xf32>
    %4 = vector.multi_reduction <add>, %3, %cst [1] : vector<8x32xf32> to vector<8xf32>
    %5 = vector.shape_cast %4 : vector<8xf32> to vector<8x1xf32>
    %c0_3 = arith.constant 0 : index
    %c0_4 = arith.constant 0 : index
    %6 = memref.load %arg3[%c0_3, %c0_4] : memref<1x1xf32, #tpu.memory_space<smem>>
    %7 = vector.broadcast %6 : f32 to vector<8x1xf32>
    %8 = arith.addf %5, %7 : vector<8x1xf32>
    %c0_5 = arith.constant 0 : index
    %c0_6 = arith.constant 0 : index
    %9 = vector.load %arg4[%c0_5, %c0_6] : memref<8x1xf32, #tpu.memory_space<vmem>>, vector<8x1xf32>
    tpu.vector_store %arg4[%c0_5, %c0_6], %8 {strides = array<i32>} : memref<8x1xf32, #tpu.memory_space<vmem>>, vector<8x1xf32>,
    return
  }
  func.func @transform_0(%arg0: i32) -> (i32, i32) {
    %c0_i32 = arith.constant 0 : i32
    %c0_i32_0 = arith.constant 0 : i32
    return %arg0, %c0_i32 : i32, i32
  }
  func.func @transform_1(%arg0: i32) -> (i32, i32) {
    %c0_i32 = arith.constant 0 : i32
    %c0_i32_0 = arith.constant 0 : i32
    %c0_i32_1 = arith.constant 0 : i32
    return %c0_i32, %c0_i32_0 : i32, i32
  }
  func.func @transform_2(%arg0: i32) -> (i32, i32) {
    %c0_i32 = arith.constant 0 : i32
    %c0_i32_0 = arith.constant 0 : i32
    %c0_i32_1 = arith.constant 0 : i32
    return %c0_i32, %c0_i32_0 : i32, i32
  }
  func.func @transform_3(%arg0: i32) -> (i32, i32) {
    %c0_i32 = arith.constant 0 : i32
    %c0_i32_0 = arith.constant 0 : i32
    return %arg0, %c0_i32 : i32, i32
  }
}

</mosaic_0001>

<bundles_post_ra>
// kernel: linear_net_forward.1
= control target key start
LH: loop header
LB: loop body
LE: loop exit
PB: predicated region body
PF: predicated region fallthrough
CT: control target
= control target key end

     0   :  { %9 = vsyncpa [#allocation4], 0  ;;  %s76_s12 = smov [#allocation3]   ;;  %s118_s0 = inlined_call_operand.hbm [shape: f32[8,32], index: 0, kind: input, shape index: {}]   ;;  %s119_s1 = inlined_call_operand.vmem [shape: f32[1,32], index: 1, kind: input, shape index: {}]   ;;  %s120_s2 = inlined_call_operand.<no memory space> [shape: f32[1,1], index: 2, kind: input, shape index: {}]   ;;  %s121_s3 = inlined_call_operand.vmem [shape: f32[8,1], index: 3, kind: output, shape index: {}]  }
   0x1   :  { %s16_s13 = sshll.u32 %s76_s12, 4  ;;  %s52_s16 = scalar_lea.hbm %s118_s0, 128  ;;  %s17_s13 = int_to_ptr.vmem [resolvable:$true] %s16_s13 }
   0x2   :  { %p53_p0 = scmp.ne.s32.totalorder %s118_s0, %s52_s16  ;;  %p56_p1 = scmp.lt.u32.totalorder %s52_s16, %s118_s0 }
   0x4   :  { %p58_p2 = pnand %p56_p1, %p53_p0 }
   0x6   :  { %61 = shalt.err (!%p58_p2)
}
   0x7   :  { %s62_s21 = scalar_lea.vmem %s17_s13, 128  ;;  %p67_p4 = scmp.lt.s32.totalorder %s17_s13, %s17_s13 }
   0x8   :  { %p63_p3 = scmp.ne.s32.totalorder %s17_s13, %s62_s21  ;;  %p68_p5 = scmp.lt.s32.totalorder %s62_s21, %s62_s21 }
   0xa   :  { %p69_p6 = por %p68_p5, %p67_p4 }
   0xc   :  { %p70_p7 = pnand %p69_p6, %p63_p3 }
   0xe   :  { %73 = shalt.err (!%p70_p7)
}
   0xf   :  { %19 = dma.hbm_to_vmem [thread:$0]  %s118_s0, 128, %s17_s13, [#allocation4]  }
  0x10   :  { %74 = dma.done.wait [#allocation4], 128  }
  0x11   :  { %75 = vsyncadd [#allocation4], 4294967168  ;;  %v27_v0 = vld [vmem:[#allocation3] sm:$0xff]  ;;  %vm36_vm0 = vcmask 261120   ;;  %v41_v4 = vstv %s120_s2  ;;  %vm43_vm1 = vcmask 7168  }
  0x12   :  { %v50_v1 = vld [vmem:[%s119_s1] ss:$0 sm:$0xff] }
  0x13   :  { %v35_v2 = vmul.f32 %v50_v1, %v27_v0 }
  0x15   :  { %v37_v3 = vsel %vm36_vm0, %v35_v2, 0.0 }
  0x16   :  { %38 = vadd.xlane.f32.xlu0 %v37_v3 }
  0xa3   :  { %v39_v5 = vpop.xlane.xlu0 %38 }
  0xa4   :  { %v42_v6 = vadd.f32 %v41_v4, %v39_v5 }
  0xa6   :  { %44 = vst.msk [vmem:[%s121_s3] sm:$0xff] %vm43_vm1, %v42_v6 }
  0xa7   :  { %49 = vsyncpa [#allocation4], 1 }

</bundles_post_ra>
